<compile_context>
chip_gen: v6e
topology: v6e:2x2x1
jax: 0.10.0
libtpu: 0.0.40
codegen_flags: <defaults>
</compile_context>

<pallas_src>
import functools

import jax
import jax.numpy as jnp
from jax import lax
from jax.experimental import pallas as pl
from jax.experimental.pallas import tpu as pltpu


def _rfam_gate_kernel(x_ref, w1_ref, b1_ref, w3_ref, b3_ref, mask_ref,
                      out_ref, *, W, C_pad):
    """One grid step: a group of samples, channels on sublanes, spatial on lanes."""
    L = x_ref.shape[-1]                              # samples_per_step * H * W

    # ---- 1x1 conv over concatenated (rgb, gate) channels + folded BN + ReLU
    x = x_ref[0]                                                   # (2C, L)
    y = jnp.dot(w1_ref[...], x, preferred_element_type=jnp.float32)
    y = jnp.maximum(y + b1_ref[...], 0.0)                          # (C_pad, L)

    # ---- 3x3 conv (padding=1) as one im2col matmul ----
    # Nine taps built in registers: masked XLU lane rolls, concatenated along
    # sublanes.  C_pad is a multiple of 8 => tile-aligned concat, no VMEM
    # scratch, no masked partial stores.  The masks are per-sample, so a roll
    # that wraps across a sample boundary (or the array end) is zeroed.
    taps = []
    for k in range(9):
        dy, dx = k // 3 - 1, k % 3 - 1
        shift = dy * W + dx                          # flat tap offset
        rolled = y if shift == 0 else pltpu.roll(y, shift=(-shift) % L, axis=1)
        taps.append(rolled * mask_ref[k:k + 1, :])   # (C_pad, L)
    im2col = jnp.concatenate(taps, axis=0)           # (9*C_pad, L), in regs

    conv3 = jnp.dot(w3_ref[...], im2col,
                    preferred_element_type=jnp.float32) + b3_ref[...]   # (C, L)

    # ---- sigmoid, lane-dense store ----
    out_ref[0] = jax.nn.sigmoid(conv3).astype(out_ref.dtype)


def _fold_params(params, C_pad):
    """Host-side constant folding.

    conv1x1 bias + eval-mode BN folded into the 1x1 weights/bias (zero-padded
    to C_pad output rows); 3x3 HWIO weights reshaped into a (C, 9*C_pad)
    im2col matrix with zero columns for the padded input channels.
    """
    eps = 1e-5
    C = params["w1"].shape[0]
    scale = params["gamma"] / jnp.sqrt(params["running_var"] + eps)    # (C,)
    shift = params["beta"] - params["running_mean"] * scale            # (C,)
    w1_eff = scale[:, None] * params["w1"]                             # (C, 2C)
    b_eff = scale * params["b1"] + shift                               # (C,)

    w1_p = jnp.zeros((C_pad, 2 * C), jnp.float32).at[:C].set(w1_eff)
    b_p = jnp.zeros((C_pad, 1), jnp.float32).at[:C, 0].set(b_eff)

    # w3 HWIO (3,3,C_in,C_out) -> (C_out, k=ky*3+kx, C_in) -> pad C_in -> flat
    w3 = jnp.transpose(params["w3"], (3, 0, 1, 2)).reshape(C, 9, C)
    w3_p = (jnp.zeros((C, 9, C_pad), jnp.float32).at[:, :, :C].set(w3)
            .reshape(C, 9 * C_pad))
    b3 = params["b3"][:, None]                                         # (C, 1)
    return w1_p, b_p, w3_p, b3


def _border_masks(H, W):
    """(9, H*W) float masks: tap (ky,kx) is valid at a pixel iff the shifted
    source pixel lies inside the image (SAME/zero padding)."""
    hh = jnp.arange(H * W, dtype=jnp.int32) // W
    ww = jnp.arange(H * W, dtype=jnp.int32) % W
    rows = []
    for k in range(9):
        dy, dx = k // 3 - 1, k % 3 - 1
        valid = (hh + dy >= 0) & (hh + dy < H) & (ww + dx >= 0) & (ww + dx < W)
        rows.append(valid.astype(jnp.float32))
    return jnp.stack(rows, axis=0)


def _default_samples_per_step(N):
    """Single grid step (all samples on lanes) on single-TC chips (v5e/v6e);
    split the batch over two parallel steps on v7x so both TensorCores work."""
    try:
        kind = jax.devices()[0].device_kind.lower()
    except Exception:
        kind = ""
    if ("v7" in kind or "tpu7" in kind) and N % 2 == 0:
        return max(1, N // 2)
    return N


def rfam_gate_pallas(rgb, gate, params, samples_per_step=None):
    """rgb, gate: (N, C, H, W) float32 (NCHW).  Returns (N, C, H, W) float32."""
    N, C, H, W = rgb.shape
    HW = H * W
    S = _default_samples_per_step(N) if samples_per_step is None else samples_per_step
    assert N % S == 0, "samples_per_step must divide the batch"
    G = N // S                         # grid steps
    L = S * HW                         # lane width per step
    assert L % 128 == 0, "lane width (samples_per_step * H * W) must be a multiple of 128"
    C_pad = max(8, ((C + 7) // 8) * 8)

    # Host-side layout plumbing (free): NCHW -> (N, C, HW), rgb/gate channel
    # concat, then group S samples along the lane axis per grid step.
    x = jnp.concatenate([rgb.reshape(N, C, HW), gate.reshape(N, C, HW)], axis=1)
    x = x.reshape(G, S, 2 * C, HW).transpose(0, 2, 1, 3).reshape(G, 2 * C, L)

    w1_p, b_p, w3_p, b3 = _fold_params(params, C_pad)
    mask = jnp.tile(_border_masks(H, W), (1, S))     # (9, L), per-sample coords

    kernel = functools.partial(_rfam_gate_kernel, W=W, C_pad=C_pad)
    out = pl.pallas_call(
        kernel,
        out_shape=jax.ShapeDtypeStruct((G, C, L), jnp.float32),
        grid_spec=pltpu.PrefetchScalarGridSpec(
            num_scalar_prefetch=0,
            grid=(G,),
            in_specs=[
                pl.BlockSpec((1, 2 * C, L), lambda g: (g, 0, 0)),     # x (cat)
                pl.BlockSpec((C_pad, 2 * C), lambda g: (0, 0)),       # folded w1
                pl.BlockSpec((C_pad, 1), lambda g: (0, 0)),           # folded bias
                pl.BlockSpec((C, 9 * C_pad), lambda g: (0, 0)),       # w3 im2col mat
                pl.BlockSpec((C, 1), lambda g: (0, 0)),               # b3
                pl.BlockSpec((9, L), lambda g: (0, 0)),               # border masks
            ],
            out_specs=pl.BlockSpec((1, C, L), lambda g: (g, 0, 0)),
        ),
        compiler_params=pltpu.CompilerParams(
            dimension_semantics=("parallel",)),       # shards batch groups on v7x
    )(x, w1_p, b_p, w3_p, b3, mask)

    return out.reshape(G, C, S, HW).transpose(0, 2, 1, 3).reshape(N, C, H, W)


def rfam_gate_reference(rgb, gate, p):
    """Plain-JAX NCHW reference built from the *unfused* parameters."""
    eps = 1e-5
    cat = jnp.concatenate([rgb, gate], axis=1)                        # (N, 2C, H, W)
    y = jnp.einsum("oc,nchw->nohw", p["w1"], cat,
                   precision=lax.Precision.HIGHEST) + p["b1"][None, :, None, None]
    scale = p["gamma"] / jnp.sqrt(p["running_var"] + eps)
    shift = p["beta"] - p["running_mean"] * scale
    y = y * scale[None, :, None, None] + shift[None, :, None, None]
    y = jnp.maximum(y, 0.0)
    y = lax.conv_general_dilated(
        y, p["w3"], window_strides=(1, 1), padding="SAME",
        dimension_numbers=("NCHW", "HWIO", "NCHW"),
        precision=lax.Precision.HIGHEST) + p["b3"][None, :, None, None]
    return jax.nn.sigmoid(y)


def make_params(key, ch):
    """Deterministic parameter init matching RFAM_Gate(ch) shapes."""
    ks = jax.random.split(key, 8)
    w1 = jax.random.normal(ks[0], (ch, 2 * ch), jnp.float32) * 0.1    # conv1x1 (C_out, 2C_in)
    b1 = jax.random.normal(ks[1], (ch,), jnp.float32) * 0.1
    gamma = 1.0 + 0.1 * jax.random.normal(ks[2], (ch,), jnp.float32)
    beta = 0.1 * jax.random.normal(ks[3], (ch,), jnp.float32)
    running_mean = 0.1 * jax.random.normal(ks[4], (ch,), jnp.float32)
    running_var = 1.0 + 0.1 * jax.random.uniform(ks[5], (ch,), jnp.float32)
    w3 = jax.random.normal(ks[6], (3, 3, ch, ch), jnp.float32) * 0.1  # HWIO
    b3 = jax.random.normal(ks[7], (ch,), jnp.float32) * 0.1
    return {"w1": w1, "b1": b1, "gamma": gamma, "beta": beta,
            "running_mean": running_mean, "running_var": running_var,
            "w3": w3, "b3": b3}


if __name__ == "__main__":
    key = jax.random.PRNGKey(0)
    k_rgb, k_gate, k_par = jax.random.split(key, 3)

    N, C, H, W = 2, 4, 16, 16            # matches PyTorch input (2, 4, 16, 16) NCHW
    rgb = jax.random.normal(k_rgb, (N, C, H, W), jnp.float32)
    gate = jax.random.normal(k_gate, (N, C, H, W), jnp.float32)
    params = make_params(k_par, C)

    out = jax.block_until_ready(rfam_gate_pallas(rgb, gate, params))
    ref = jax.block_until_ready(rfam_gate_reference(rgb, gate, params))

    assert out.shape == (N, C, H, W)
    assert jnp.allclose(out, ref, atol=1e-5, rtol=1e-5), "mismatch vs reference"

    print("KERNEL_OK")
</pallas_src>

<mosaic_0001>
module attributes {stable_mosaic.version = 11 : i64} {
  func.func @_rfam_gate_kernel(%arg0: i32, %arg1: memref<1x8x512xf32, #tpu.memory_space<vmem>>, %arg2: memref<8x8xf32, #tpu.memory_space<vmem>>, %arg3: memref<8x1xf32, #tpu.memory_space<vmem>>, %arg4: memref<4x72xf32, #tpu.memory_space<vmem>>, %arg5: memref<4x1xf32, #tpu.memory_space<vmem>>, %arg6: memref<9x512xf32, #tpu.memory_space<vmem>>, %arg7: memref<1x4x512xf32, #tpu.memory_space<vmem>>) attributes {dimension_semantics = [#tpu.dimension_semantics<parallel>], iteration_bounds = array<i64: 1>, scalar_prefetch = 0 : i64, scratch_operands = 0 : i64, tpu.core_type = #tpu.core_type<tc>, window_params = [{transform_indices = @transform_0, window_bounds = array<i64: 1, 8, 512>}, {pipeline_mode = #tpu.pipeline_mode<synchronous>, transform_indices = @transform_1, window_bounds = array<i64: 8, 8>}, {pipeline_mode = #tpu.pipeline_mode<synchronous>, transform_indices = @transform_2, window_bounds = array<i64: 8, 1>}, {pipeline_mode = #tpu.pipeline_mode<synchronous>, transform_indices = @transform_3, window_bounds = array<i64: 4, 72>}, {pipeline_mode = #tpu.pipeline_mode<synchronous>, transform_indices = @transform_4, window_bounds = array<i64: 4, 1>}, {pipeline_mode = #tpu.pipeline_mode<synchronous>, transform_indices = @transform_5, window_bounds = array<i64: 9, 512>}, {transform_indices = @transform_6, window_bounds = array<i64: 1, 4, 512>}]} {
    %c0 = arith.constant 0 : index
    %c0_0 = arith.constant 0 : index
    %c0_1 = arith.constant 0 : index
    %0 = vector.load %arg1[%c0, %c0_0, %c0_1] : memref<1x8x512xf32, #tpu.memory_space<vmem>>, vector<1x8x512xf32>
    %1 = vector.shape_cast %0 : vector<1x8x512xf32> to vector<8x512xf32>
    %c0_2 = arith.constant 0 : index
    %c0_3 = arith.constant 0 : index
    %2 = vector.load %arg2[%c0_2, %c0_3] : memref<8x8xf32, #tpu.memory_space<vmem>>, vector<8x8xf32>
    %cst = arith.constant dense<0.000000e+00> : vector<8x512xf32>
    %3 = tpu.matmul %2, %1, %cst {dimension_numbers = #tpu.dot_dimension_numbers<[1], [0], [0], [1], [0, 0, 1, 1], [], []>} : vector<8x8xf32>, vector<8x512xf32>, vector<8x512xf32> -> vector<8x512xf32>
    %c0_4 = arith.constant 0 : index
    %c0_5 = arith.constant 0 : index
    %4 = vector.load %arg3[%c0_4, %c0_5] : memref<8x1xf32, #tpu.memory_space<vmem>>, vector<8x1xf32>
    %5 = vector.broadcast %4 : vector<8x1xf32> to vector<8x512xf32>
    %6 = arith.addf %3, %5 : vector<8x512xf32>
    %cst_6 = arith.constant 0.000000e+00 : f32
    %7 = vector.broadcast %cst_6 : f32 to vector<8x512xf32>
    %8 = arith.maximumf %6, %7 : vector<8x512xf32>
    %c17_i32 = arith.constant 17 : i32
    %9 = tpu.dynamic_rotate %8 by %c17_i32 dim 1 : vector<8x512xf32>, i32 -> vector<8x512xf32>
    %c0_7 = arith.constant 0 : index
    %c0_8 = arith.constant 0 : index
    %10 = vector.load %arg6[%c0_7, %c0_8] : memref<9x512xf32, #tpu.memory_space<vmem>>, vector<1x512xf32>
    %11 = vector.broadcast %10 : vector<1x512xf32> to vector<8x512xf32>
    %12 = arith.mulf %9, %11 : vector<8x512xf32>
    %c16_i32 = arith.constant 16 : i32
    %13 = tpu.dynamic_rotate %8 by %c16_i32 dim 1 : vector<8x512xf32>, i32 -> vector<8x512xf32>
    %c1 = arith.constant 1 : index
    %c0_9 = arith.constant 0 : index
    %14 = vector.load %arg6[%c1, %c0_9] : memref<9x512xf32, #tpu.memory_space<vmem>>, vector<1x512xf32>
    %15 = vector.broadcast %14 : vector<1x512xf32> to vector<8x512xf32>
    %16 = arith.mulf %13, %15 : vector<8x512xf32>
    %c15_i32 = arith.constant 15 : i32
    %17 = tpu.dynamic_rotate %8 by %c15_i32 dim 1 : vector<8x512xf32>, i32 -> vector<8x512xf32>
    %c2 = arith.constant 2 : index
    %c0_10 = arith.constant 0 : index
    %18 = vector.load %arg6[%c2, %c0_10] : memref<9x512xf32, #tpu.memory_space<vmem>>, vector<1x512xf32>
    %19 = vector.broadcast %18 : vector<1x512xf32> to vector<8x512xf32>
    %20 = arith.mulf %17, %19 : vector<8x512xf32>
    %c1_i32 = arith.constant 1 : i32
    %21 = tpu.dynamic_rotate %8 by %c1_i32 dim 1 : vector<8x512xf32>, i32 -> vector<8x512xf32>
    %c3 = arith.constant 3 : index
    %c0_11 = arith.constant 0 : index
    %22 = vector.load %arg6[%c3, %c0_11] : memref<9x512xf32, #tpu.memory_space<vmem>>, vector<1x512xf32>
    %23 = vector.broadcast %22 : vector<1x512xf32> to vector<8x512xf32>
    %24 = arith.mulf %21, %23 : vector<8x512xf32>
    %c4 = arith.constant 4 : index
    %c0_12 = arith.constant 0 : index
    %25 = vector.load %arg6[%c4, %c0_12] : memref<9x512xf32, #tpu.memory_space<vmem>>, vector<1x512xf32>
    %26 = vector.broadcast %25 : vector<1x512xf32> to vector<8x512xf32>
    %27 = arith.mulf %8, %26 : vector<8x512xf32>
    %c511_i32 = arith.constant 511 : i32
    %28 = tpu.dynamic_rotate %8 by %c511_i32 dim 1 : vector<8x512xf32>, i32 -> vector<8x512xf32>
    %c5 = arith.constant 5 : index
    %c0_13 = arith.constant 0 : index
    %29 = vector.load %arg6[%c5, %c0_13] : memref<9x512xf32, #tpu.memory_space<vmem>>, vector<1x512xf32>
    %30 = vector.broadcast %29 : vector<1x512xf32> to vector<8x512xf32>
    %31 = arith.mulf %28, %30 : vector<8x512xf32>
    %c497_i32 = arith.constant 497 : i32
    %32 = tpu.dynamic_rotate %8 by %c497_i32 dim 1 : vector<8x512xf32>, i32 -> vector<8x512xf32>
    %c6 = arith.constant 6 : index
    %c0_14 = arith.constant 0 : index
    %33 = vector.load %arg6[%c6, %c0_14] : memref<9x512xf32, #tpu.memory_space<vmem>>, vector<1x512xf32>
    %34 = vector.broadcast %33 : vector<1x512xf32> to vector<8x512xf32>
    %35 = arith.mulf %32, %34 : vector<8x512xf32>
    %c496_i32 = arith.constant 496 : i32
    %36 = tpu.dynamic_rotate %8 by %c496_i32 dim 1 : vector<8x512xf32>, i32 -> vector<8x512xf32>
    %c7 = arith.constant 7 : index
    %c0_15 = arith.constant 0 : index
    %37 = vector.load %arg6[%c7, %c0_15] : memref<9x512xf32, #tpu.memory_space<vmem>>, vector<1x512xf32>
    %38 = vector.broadcast %37 : vector<1x512xf32> to vector<8x512xf32>
    %39 = arith.mulf %36, %38 : vector<8x512xf32>
    %c495_i32 = arith.constant 495 : i32
    %40 = tpu.dynamic_rotate %8 by %c495_i32 dim 1 : vector<8x512xf32>, i32 -> vector<8x512xf32>
    %c8 = arith.constant 8 : index
    %c0_16 = arith.constant 0 : index
    %41 = vector.load %arg6[%c8, %c0_16] : memref<9x512xf32, #tpu.memory_space<vmem>>, vector<1x512xf32>
    %42 = vector.broadcast %41 : vector<1x512xf32> to vector<8x512xf32>
    %43 = arith.mulf %40, %42 : vector<8x512xf32>
    %44 = tpu.concatenate %12, %16, %20, %24, %27, %31, %35, %39, %43 in 0 : vector<8x512xf32>, vector<8x512xf32>, vector<8x512xf32>, vector<8x512xf32>, vector<8x512xf32>, vector<8x512xf32>, vector<8x512xf32>, vector<8x512xf32>, vector<8x512xf32> -> vector<72x512xf32>
    %c0_17 = arith.constant 0 : index
    %c0_18 = arith.constant 0 : index
    %45 = vector.load %arg4[%c0_17, %c0_18] : memref<4x72xf32, #tpu.memory_space<vmem>>, vector<4x72xf32>
    %cst_19 = arith.constant dense<0.000000e+00> : vector<4x512xf32>
    %46 = tpu.matmul %45, %44, %cst_19 {dimension_numbers = #tpu.dot_dimension_numbers<[1], [0], [0], [1], [0, 0, 1, 1], [], []>} : vector<4x72xf32>, vector<72x512xf32>, vector<4x512xf32> -> vector<4x512xf32>
    %c0_20 = arith.constant 0 : index
    %c0_21 = arith.constant 0 : index
    %47 = vector.load %arg5[%c0_20, %c0_21] : memref<4x1xf32, #tpu.memory_space<vmem>>, vector<4x1xf32>
    %48 = vector.broadcast %47 : vector<4x1xf32> to vector<4x512xf32>
    %49 = arith.addf %46, %48 : vector<4x512xf32>
    %50 = arith.negf %49 : vector<4x512xf32>
    %51 = math.exp %50 : vector<4x512xf32>
    %cst_22 = arith.constant 1.000000e+00 : f32
    %52 = vector.broadcast %cst_22 : f32 to vector<4x512xf32>
    %53 = arith.addf %52, %51 : vector<4x512xf32>
    %54 = arith.divf %52, %53 : vector<4x512xf32>
    %c0_23 = arith.constant 0 : index
    %c0_24 = arith.constant 0 : index
    %c0_25 = arith.constant 0 : index
    %55 = vector.load %arg7[%c0_23, %c0_24, %c0_25] : memref<1x4x512xf32, #tpu.memory_space<vmem>>, vector<1x4x512xf32>
    %56 = vector.shape_cast %55 : vector<1x4x512xf32> to vector<4x512xf32>
    %57 = vector.shape_cast %54 : vector<4x512xf32> to vector<1x4x512xf32>
    tpu.vector_store %arg7[%c0_23, %c0_24, %c0_25], %57 {strides = array<i32>} : memref<1x4x512xf32, #tpu.memory_space<vmem>>, vector<1x4x512xf32>,
    return
  }
  func.func @transform_0(%arg0: i32) -> (i32, i32, i32) {
    %c0_i32 = arith.constant 0 : i32
    %c0_i32_0 = arith.constant 0 : i32
    %c0_i32_1 = arith.constant 0 : i32
    return %arg0, %c0_i32, %c0_i32_0 : i32, i32, i32
  }
  func.func @transform_1(%arg0: i32) -> (i32, i32) {
    %c0_i32 = arith.constant 0 : i32
    %c0_i32_0 = arith.constant 0 : i32
    %c0_i32_1 = arith.constant 0 : i32
    return %c0_i32, %c0_i32_0 : i32, i32
  }
  func.func @transform_2(%arg0: i32) -> (i32, i32) {
    %c0_i32 = arith.constant 0 : i32
    %c0_i32_0 = arith.constant 0 : i32
    %c0_i32_1 = arith.constant 0 : i32
    return %c0_i32, %c0_i32_0 : i32, i32
  }
  func.func @transform_3(%arg0: i32) -> (i32, i32) {
    %c0_i32 = arith.constant 0 : i32
    %c0_i32_0 = arith.constant 0 : i32
    %c0_i32_1 = arith.constant 0 : i32
    return %c0_i32, %c0_i32_0 : i32, i32
  }
  func.func @transform_4(%arg0: i32) -> (i32, i32) {
    %c0_i32 = arith.constant 0 : i32
    %c0_i32_0 = arith.constant 0 : i32
    %c0_i32_1 = arith.constant 0 : i32
    return %c0_i32, %c0_i32_0 : i32, i32
  }
  func.func @transform_5(%arg0: i32) -> (i32, i32) {
    %c0_i32 = arith.constant 0 : i32
    %c0_i32_0 = arith.constant 0 : i32
    %c0_i32_1 = arith.constant 0 : i32
    return %c0_i32, %c0_i32_0 : i32, i32
  }
  func.func @transform_6(%arg0: i32) -> (i32, i32, i32) {
    %c0_i32 = arith.constant 0 : i32
    %c0_i32_0 = arith.constant 0 : i32
    %c0_i32_1 = arith.constant 0 : i32
    return %arg0, %c0_i32, %c0_i32_0 : i32, i32, i32
  }
}

</mosaic_0001>

<bundles_post_ra>
// kernel: tpu_custom_call.1
= control target key start
LH: loop header
LB: loop body
LE: loop exit
PB: predicated region body
PF: predicated region fallthrough
CT: control target
= control target key end

     0   :  { %11 = vsyncpa [#allocation3], 0  ;;  %s1218_s0 = inlined_call_operand.hbm [shape: f32[1,8,512], index: 0, kind: input, shape index: {}]   ;;  %s1219_s1 = inlined_call_operand.vmem [shape: f32[8,8], index: 1, kind: input, shape index: {}]   ;;  %s1220_s2 = inlined_call_operand.vmem [shape: f32[8,1], index: 2, kind: input, shape index: {}]   ;;  %s1221_s3 = inlined_call_operand.vmem [shape: f32[4,72], index: 3, kind: input, shape index: {}]   ;;  %s1222_s4 = inlined_call_operand.vmem [shape: f32[4,1], index: 4, kind: input, shape index: {}]   ;;  %s1223_s5 = inlined_call_operand.hbm [shape: f32[9,512], index: 5, kind: input, shape index: {}]   ;;  %s1224_s6 = inlined_call_operand.hbm [shape: f32[1,4,512], index: 6, kind: output, shape index: {}]  }
   0x1   :  { %12 = vsyncpa [#allocation6], 0 }
   0x2   :  { %13 = vsyncpa [#allocation4], 0  ;;  %s869_s21 = smov [#allocation2]   ;;  %s870_s23 = smov [#allocation5]  }
   0x3   :  { %s20_s22 = sshll.u32 %s869_s21, 4  ;;  %s37_s24 = sshll.u32 %s870_s23, 4  ;;  %s21_s22 = int_to_ptr.vmem [resolvable:$true] %s20_s22  ;;  %s38_s24 = int_to_ptr.vmem [resolvable:$true] %s37_s24 }
   0x4   :  { %s811_s25 = scalar_lea.vmem %s21_s22, 512  ;;  %p816_p1 = scmp.lt.s32.totalorder %s21_s22, %s21_s22 }
   0x5   :  { %p812_p0 = scmp.ne.s32.totalorder %s21_s22, %s811_s25  ;;  %p817_p2 = scmp.lt.s32.totalorder %s811_s25, %s811_s25 }
   0x7   :  { %p818_p3 = por %p817_p2, %p816_p1 }
   0x9   :  { %p819_p4 = pnand %p818_p3, %p812_p0 }
   0xb   :  { %822 = shalt.err (!%p819_p4)
}
   0xc   :  { %23 = dma.hbm_to_vmem [thread:$0]  %s1218_s0, 512, %s21_s22, [#allocation3]  }
   0xd   :  { %s831_s28 = scalar_lea.vmem %s38_s24, 1024  ;;  %p836_p6 = scmp.lt.s32.totalorder %s38_s24, %s38_s24 }
   0xe   :  { %p832_p5 = scmp.ne.s32.totalorder %s38_s24, %s831_s28  ;;  %p837_p7 = scmp.lt.s32.totalorder %s831_s28, %s831_s28 }
  0x10   :  { %p838_p8 = por %p837_p7, %p836_p6 }
  0x12   :  { %p839_p9 = pnand %p838_p8, %p832_p5 }
  0x14   :  { %842 = shalt.err (!%p839_p9)
}
  0x15   :  { %s871_s29 = smov 512   ;;  %s872_s30 = smov 32  }
  0x16   :  { %43 = dma.hbm_to_vmem [thread:$0]  %s1223_s5, 1024, %s38_s24, [#allocation6], %s871_s29, %s871_s29, %s872_s30  }
  0x17   :  { %863 = dma.done.wait [#allocation3], 512  }
  0x18   :  { %864 = vsyncadd [#allocation3], 4294966784 }
  0x19   :  { %865 = dma.done.wait [#allocation6], 1024  }
  0x1a   :  { %866 = vsyncadd [#allocation6], 4294966272  ;;  %v873_v0 = vmov 0.0   ;;  %v874_v1 = vmov 0   ;;  %v51_v2 = vld [vmem:[#allocation2 + $0x8] sm:$0xff]  ;;  %v53_v3 = vld [vmem:[#allocation2 + $0x18] sm:$0xff]  ;;  %v219_v22 = vlaneseq }
  0x1b   :  { %129 = vmatprep.mubr.f32.mxu0 %v873_v0  ;;  %200 = vmatprep.mubr.f32.mxu1 %v873_v0  ;;  %v50_v4 = vld [vmem:[#allocation2] sm:$0xff]  ;;  %vm61_vm0 = vcmask 64512   ;;  %v52_v5 = vld [vmem:[#allocation2 + $0x10] sm:$0xff]  ;;  %s877_s11 = smov 113   ;;  %s878_s12 = smov 127   ;;  %vm566_vm9 = vcmask 588800  }
  0x1c   :  { %785 = vset.pattern.permute.xlu0 %v874_v1  ;;  %786 = vset.pattern.permute.xlu1 %v874_v1  ;;  %v54_v6 = vld [vmem:[%s1219_s1] sm:$0xff]  ;;  %s875_s1 = smov 111   ;;  %s879_s13 = smov 1   ;;  %v978_v23 = vshrl.u32 %v219_v22, 7  ;;  %v980_v24 = vand.u32 127, %v219_v22 }
  0x1d   :  { %95 = vmatprep.subr.mxu0 %v51_v2  ;;  %166 = vmatprep.subr.mxu1 %v53_v3  ;;  %v55_v7 = vld [vmem:[%s1220_s2] sm:$0xff]  ;;  %s876_s2 = smov 112   ;;  %s880_s14 = smov 15  }
  0x1e   :  { %96 = vmatpush1.msra.mxu0 %v50_v4  ;;  %167 = vmatpush1.msra.mxu1 %v52_v5  ;;  %s881_s15 = smov 16   ;;  %s882_s16 = smov 17   ;;  %v560_v21 = vld [vmem:[%s1222_s4] sm:$0xf]  ;;  %v989_v28 = vsub.s32 2, %v978_v23  ;;  %v992_v29 = vsub.s32 3, %v978_v23 }
  0x1f   :  { %762 = vmatmul.mubr.msk.f32.vlgmr.msra.gmra.mxu0 %vm61_vm0, %v54_v6  ;;  %763 = vmatmul.mubr.msk.f32.vlgmr.msra.gmra.mxu1 %vm61_vm0, %v54_v6  ;;  %v982_v25 = vld [vmem:[#allocation5 + $0x20] ss:$8 sm:$0xf]  ;;  %vm527_vm1 = vcmp.lt.s32.totalorder %v980_v24, 111  ;;  %vm487_vm2 = vcmp.lt.s32.totalorder %v980_v24, 112  ;;  %vm447_vm3 = vcmp.lt.s32.totalorder %v980_v24, 113 }
  0x20   :  { %58 = vperm.xlu0 %785, %v55_v7   ;;  %634 = vmatprep.mubr.f32.mxu0 %v873_v0  ;;  %v546_v30 = vrot.slane %v982_v25, %v989_v28  ;;  %v550_v31 = vrot.slane %v982_v25, %v992_v29  ;;  %v1011_v40 = vld [vmem:[#allocation5 + $0x7] ss:$8 sm:$0xf]  ;;  %v1030_v51 = vld [vmem:[#allocation5 + $0x6] ss:$8 sm:$0xf] }
  0x21   :  { %705 = vmatprep.mubr.f32.mxu1 %v873_v0  ;;  %v506_v41 = vrot.slane %v1011_v40, %v989_v28  ;;  %v510_v42 = vrot.slane %v1011_v40, %v992_v29  ;;  %v466_v52 = vrot.slane %v1030_v51, %v989_v28  ;;  %v470_v53 = vrot.slane %v1030_v51, %v992_v29  ;;  %v1049_v62 = vld [vmem:[#allocation5 + $0x5] ss:$8 sm:$0xf]  ;;  %v1055_v1 = vld [vmem:[#allocation5 + $0x4] ss:$8 sm:$0xf] }
  0x22   :  { %v426_v63 = vrot.slane %v1049_v62, %v989_v28  ;;  %v430_v0 = vrot.slane %v1049_v62, %v992_v29  ;;  %vm407_vm4 = vcmp.lt.s32.totalorder %v980_v24, 127  ;;  %v390_v4 = vrot.slane %v1055_v1, %v992_v29 }
  0x23   :  { %v386_v7 = vrot.slane %v1055_v1, %v989_v28  ;;  %vm340_vm5 = vcmp.lt.s32.totalorder %v980_v24, 1  ;;  %vm300_vm6 = vcmp.lt.s32.totalorder %v980_v24, 15  ;;  %vm260_vm7 = vcmp.lt.s32.totalorder %v980_v24, 16 }
  0x24   :  { %vm221_vm8 = vcmp.lt.s32.totalorder %v980_v24, 17 }
  0x9b   :  { %v59_v8 = vpop.permute.xlu0 %58 }
  0xdf   :  { %v131_v9 = vpop.f32.mrf.mxu0  ;;  %v202_v10 = vpop.f32.mrf.mxu1 }
  0xe0   :  { %v132_v11 = vadd.f32 %v131_v9, %v59_v8  ;;  %v203_v12 = vadd.f32 %v202_v10, %v59_v8 }
  0xe1   :  { %v204_v13 = vpop.f32.mrf.mxu1  ;;  %v133_v17 = vpop.f32.mrf.mxu0 }
  0xe2   :  { %v931_v14 = vmax.f32 %v132_v11, 0.0  ;;  %v933_v15 = vmax.f32 %v203_v12, 0.0  ;;  %v205_v16 = vadd.f32 %v204_v13, %v59_v8  ;;  %v134_v18 = vadd.f32 %v133_v17, %v59_v8  ;;  %v1070_v11 = vld [vmem:[#allocation5 + $0x3] ss:$8 sm:$0xf] }
  0xe3   :  { %v363_v17 = vrot.slane %v1070_v11, %v992_v29 }
  0xe4   :  { %523 = vrot.lane.b32.xlu1 %v933_v15, %s875_s1  ;;  %519 = vrot.lane.b32.xlu0 %v931_v14, %s875_s1  ;;  %v939_v19 = vmax.f32 %v205_v16, 0.0  ;;  %v944_v20 = vmax.f32 %v134_v18, 0.0  ;;  %v397_v16 = vmul.f32 %v386_v7, %v933_v15  ;;  %v359_v18 = vrot.slane %v1070_v11, %v989_v28  ;;  %v266_v7 = vld [vmem:[#allocation5 + $0x1] ss:$8 sm:$0xf] }
  0xe6   :  { %v398_v13 = vmul.f32 %v390_v4, %v939_v19 }
  0xe8   :  { %479 = vrot.lane.b32.xlu1 %v931_v14, %s876_s2  ;;  %525 = vrot.lane.b32.xlu0 %v939_v19, %s875_s1 }
  0xec   :  { %483 = vrot.lane.b32.xlu1 %v933_v15, %s876_s2  ;;  %481 = vrot.lane.b32.xlu0 %v944_v20, %s876_s2 }
  0xf0   :  { %439 = vrot.lane.b32.xlu1 %v931_v14, %s877_s11  ;;  %485 = vrot.lane.b32.xlu0 %v939_v19, %s876_s2 }
  0xf4   :  { %443 = vrot.lane.b32.xlu1 %v933_v15, %s877_s11  ;;  %441 = vrot.lane.b32.xlu0 %v944_v20, %s877_s11 }
  0xf8   :  { %399 = vrot.lane.b32.xlu1 %v931_v14, %s878_s12  ;;  %445 = vrot.lane.b32.xlu0 %v939_v19, %s877_s11 }
  0xfc   :  { %403 = vrot.lane.b32.xlu1 %v933_v15, %s878_s12  ;;  %401 = vrot.lane.b32.xlu0 %v944_v20, %s878_s12 }
 0x100   :  { %332 = vrot.lane.b32.xlu1 %v931_v14, %s879_s13  ;;  %405 = vrot.lane.b32.xlu0 %v939_v19, %s878_s12 }
 0x104   :  { %336 = vrot.lane.b32.xlu1 %v933_v15, %s879_s13  ;;  %334 = vrot.lane.b32.xlu0 %v944_v20, %s879_s13 }
 0x108   :  { %292 = vrot.lane.b32.xlu1 %v931_v14, %s880_s14  ;;  %338 = vrot.lane.b32.xlu0 %v939_v19, %s879_s13 }
 0x10c   :  { %296 = vrot.lane.b32.xlu1 %v933_v15, %s880_s14  ;;  %294 = vrot.lane.b32.xlu0 %v944_v20, %s880_s14 }
 0x110   :  { %521 = vrot.lane.b32.xlu1 %v944_v20, %s875_s1  ;;  %298 = vrot.lane.b32.xlu0 %v939_v19, %s880_s14 }
 0x114   :  { %252 = vrot.lane.b32.xlu1 %v931_v14, %s881_s15  ;;  %254 = vrot.lane.b32.xlu0 %v944_v20, %s881_s15 }
 0x118   :  { %256 = vrot.lane.b32.xlu1 %v933_v15, %s881_s15  ;;  %258 = vrot.lane.b32.xlu0 %v939_v19, %s881_s15 }
 0x11c   :  { %211 = vrot.lane.b32.xlu1 %v931_v14, %s882_s16  ;;  %213 = vrot.lane.b32.xlu0 %v944_v20, %s882_s16 }
 0x120   :  { %215 = vrot.lane.b32.xlu1 %v933_v15, %s882_s16  ;;  %217 = vrot.lane.b32.xlu0 %v939_v19, %s882_s16 }
 0x124   :  { %563 = vperm.xlu1 %786, %v560_v21  }
 0x156   :  { %v984_v26 = vpop.permute.xlu1 %523  ;;  %v986_v27 = vpop.permute.xlu0 %519 }
 0x15a   :  { %v999_v32 = vpop.permute.xlu1 %479  ;;  %v526_v33 = vpop.permute.xlu0 %525 }
 0x15b   :  { %v528_v34 = vsel %vm527_vm1, %v984_v26, %v526_v33  ;;  %v531_v35 = vsel %vm527_vm1, %v526_v33, %v986_v27 }
 0x15c   :  { %v557_v36 = vmul.f32 %v546_v30, %v528_v34  ;;  %v558_v37 = vmul.f32 %v550_v31, %v531_v35  ;;  %v1092_v31 = vsub.s32 0, %v978_v23  ;;  %v1095_v34 = vsub.s32 1, %v978_v23 }
 0x15e   :  { %v1007_v38 = vpop.permute.xlu1 %483  ;;  %655 = vmatprep.subr.mxu1 %v558_v37  ;;  %v1009_v39 = vpop.permute.xlu0 %481 }
 0x15f   :  { %656 = vmatpush1.msra.mxu1 %v557_v36  ;;  %v1097_v36 = vld [vmem:[#allocation5 + $0x2] ss:$8 sm:$0xf] }
 0x160   :  { %v319_v23 = vrot.slane %v1097_v36, %v989_v28 }
 0x162   :  { %v1018_v43 = vpop.permute.xlu1 %439  ;;  %v486_v44 = vpop.permute.xlu0 %485 }
 0x163   :  { %v488_v45 = vsel %vm487_vm2, %v1007_v38, %v486_v44  ;;  %v491_v46 = vsel %vm487_vm2, %v486_v44, %v999_v32  ;;  %v323_v44 = vrot.slane %v1097_v36, %v992_v29 }
 0x164   :  { %v517_v47 = vmul.f32 %v506_v41, %v488_v45  ;;  %v518_v48 = vmul.f32 %v510_v42, %v491_v46  ;;  %v538_v41 = vrot.slane %v982_v25, %v1092_v31  ;;  %v542_v42 = vrot.slane %v982_v25, %v1095_v34 }
 0x165   :  { %v378_v45 = vrot.slane %v1055_v1, %v1092_v31  ;;  %v498_v46 = vrot.slane %v1011_v40, %v1092_v31 }
 0x166   :  { %v1026_v49 = vpop.permute.xlu1 %443  ;;  %657 = vmatprep.subr.mxu1 %v518_v48  ;;  %v1028_v50 = vpop.permute.xlu0 %441  ;;  %v462_v48 = vrot.slane %v1030_v51, %v1095_v34 }
 0x167   :  { %658 = vmatpush1.msra.mxu1 %v517_v47  ;;  %v502_v47 = vrot.slane %v1011_v40, %v1095_v34 }
 0x16a   :  { %v1037_v54 = vpop.permute.xlu1 %399  ;;  %v446_v55 = vpop.permute.xlu0 %445 }
 0x16b   :  { %v448_v56 = vsel %vm447_vm3, %v1026_v49, %v446_v55  ;;  %v451_v57 = vsel %vm447_vm3, %v446_v55, %v1018_v43  ;;  %v489_v55 = vsel %vm487_vm2, %v1009_v39, %v1007_v38  ;;  %v458_v38 = vrot.slane %v1030_v51, %v1092_v31 }
 0x16c   :  { %v477_v58 = vmul.f32 %v466_v52, %v448_v56  ;;  %v478_v59 = vmul.f32 %v470_v53, %v451_v57  ;;  %v516_v4 = vmul.f32 %v502_v47, %v489_v55 }
 0x16e   :  { %v1045_v60 = vpop.permute.xlu1 %403  ;;  %659 = vmatprep.subr.mxu1 %v478_v59  ;;  %v1047_v61 = vpop.permute.xlu0 %401 }
 0x16f   :  { %660 = vmatpush1.msra.mxu1 %v477_v58  ;;  %v490_v58 = vsel %vm487_vm2, %v999_v32, %v1009_v39  ;;  %v450_v32 = vsel %vm447_vm3, %v1018_v43, %v1028_v50  ;;  %v422_v39 = vrot.slane %v1049_v62, %v1095_v34 }
 0x172   :  { %v1058_v2 = vpop.permute.xlu1 %332  ;;  %v406_v3 = vpop.permute.xlu0 %405 }
 0x173   :  { %v408_v5 = vsel %vm407_vm4, %v1045_v60, %v406_v3  ;;  %v411_v6 = vsel %vm407_vm4, %v406_v3, %v1037_v54  ;;  %v382_v3 = vrot.slane %v1055_v1, %v1095_v34  ;;  %v409_v1 = vsel %vm407_vm4, %v1047_v61, %v1045_v60 }
 0x174   :  { %v437_v8 = vmul.f32 %v426_v63, %v408_v5  ;;  %v438_v9 = vmul.f32 %v430_v0, %v411_v6  ;;  %v515_v6 = vmul.f32 %v498_v46, %v490_v58  ;;  %v395_v60 = vmul.f32 %v378_v45, %v931_v14 }
 0x176   :  { %v337_v10 = vpop.permute.xlu1 %336  ;;  %661 = vmatprep.subr.mxu1 %v438_v9  ;;  %v1072_v12 = vpop.permute.xlu0 %334  ;;  %v283_v9 = vrot.slane %v266_v7, %v992_v29 }
 0x177   :  { %662 = vmatpush1.msra.mxu1 %v437_v8  ;;  %v342_v21 = vsel %vm340_vm5, %v1072_v12, %v337_v10  ;;  %v279_v8 = vrot.slane %v266_v7, %v989_v28 }
 0x178   :  { %663 = vmatprep.subr.mxu1 %v398_v13  ;;  %v370_v33 = vmul.f32 %v359_v18, %v342_v21  ;;  %v436_v13 = vmul.f32 %v422_v39, %v409_v1 }
 0x179   :  { %664 = vmatpush1.msra.mxu1 %v397_v16  ;;  %v355_v16 = vrot.slane %v1070_v11, %v1095_v34 }
 0x17a   :  { %v1084_v22 = vpop.permute.xlu1 %292  ;;  %v1086_v19 = vpop.permute.xlu0 %338 }
 0x17b   :  { %v341_v15 = vsel %vm340_vm5, %v337_v10, %v1086_v19  ;;  %v396_v10 = vmul.f32 %v382_v3, %v944_v20  ;;  %v343_v20 = vsel %vm340_vm5, %v1058_v2, %v1072_v12 }
 0x17c   :  { %v371_v30 = vmul.f32 %v363_v17, %v341_v15  ;;  %v351_v17 = vrot.slane %v1070_v11, %v1092_v31  ;;  %v226_v15 = vld [vmem:[#allocation5] ss:$8 sm:$0xf]  ;;  %v344_v11 = vsel %vm340_vm5, %v1086_v19, %v1058_v2  ;;  %v369_v2 = vmul.f32 %v355_v16, %v343_v20 }
 0x17d   :  { %v239_v47 = vrot.slane %v226_v15, %v989_v28 }
 0x17e   :  { %v297_v35 = vpop.permute.xlu1 %296  ;;  %665 = vmatprep.subr.mxu1 %v371_v30  ;;  %v1099_v37 = vpop.permute.xlu0 %294  ;;  %v315_v30 = vrot.slane %v1097_v36, %v1095_v34  ;;  %v368_v46 = vmul.f32 %v351_v17, %v344_v11 }
 0x17f   :  { %666 = vmatpush1.msra.mxu1 %v370_v33  ;;  %v302_v25 = vsel %vm300_vm6, %v1099_v37, %v297_v35  ;;  %v303_v12 = vsel %vm300_vm6, %v1084_v22, %v1099_v37  ;;  %v235_v37 = vrot.slane %v226_v15, %v1095_v34 }
 0x182   :  { %v522_v52 = vpop.permute.xlu1 %521  ;;  %v299_v53 = vpop.permute.xlu0 %298 }
 0x183   :  { %v529_v56 = vsel %vm527_vm1, %v522_v52, %v984_v26  ;;  %v530_v40 = vsel %vm527_vm1, %v986_v27, %v522_v52  ;;  %v301_v57 = vsel %vm300_vm6, %v297_v35, %v299_v53  ;;  %v449_v26 = vsel %vm447_vm3, %v1028_v50, %v1026_v49 }
 0x184   :  { %v555_v59 = vmul.f32 %v538_v41, %v530_v40  ;;  %v556_v63 = vmul.f32 %v542_v42, %v529_v56  ;;  %v331_v0 = vmul.f32 %v323_v44, %v301_v57  ;;  %v330_v27 = vmul.f32 %v319_v23, %v302_v25 }
 0x185   :  { %v418_v49 = vrot.slane %v1049_v62, %v1092_v31  ;;  %v476_v43 = vmul.f32 %v462_v48, %v449_v26  ;;  %v410_v50 = vsel %vm407_vm4, %v1037_v54, %v1047_v61  ;;  %v475_v62 = vmul.f32 %v458_v38, %v450_v32  ;;  %v559_v38 = vld [vmem:[%s1221_s3] sm:$0xf]  ;;  %s883_s3 = smov [#allocation7]  }
 0x186   :  { %584 = vmatprep.subr.mxu0 %v556_v63  ;;  %v253_v51 = vpop.permute.xlu1 %252  ;;  %667 = vmatprep.subr.mxu1 %v331_v0  ;;  %v255_v5 = vpop.permute.xlu0 %254  ;;  %v311_v41 = vrot.slane %v1097_v36, %v1092_v31  ;;  %v275_v42 = vrot.slane %v266_v7, %v1095_v34  ;;  %v271_v44 = vrot.slane %v266_v7, %v1092_v31  ;;  %s752_s20 = sshll.u32 %s883_s3, 4  ;;  %s753_s20 = int_to_ptr.vmem [resolvable:$true] %s752_s20 }
 0x187   :  { %585 = vmatpush1.msra.mxu0 %v555_v59  ;;  %668 = vmatpush1.msra.mxu1 %v330_v27  ;;  %v435_v18 = vmul.f32 %v418_v49, %v410_v50  ;;  %v304_v19 = vsel %vm300_vm6, %v299_v53, %v1084_v22  ;;  %v263_v36 = vsel %vm260_vm7, %v253_v51, %v255_v5  ;;  %s843_s21 = scalar_lea.vmem %s753_s20, 256  ;;  %p848_p11 = scmp.lt.s32.totalorder %s753_s20, %s753_s20 }
 0x188   :  { %586 = vmatprep.subr.mxu0 %v516_v4  ;;  %v329_v48 = vmul.f32 %v315_v30, %v303_v12  ;;  %v231_v25 = vrot.slane %v226_v15, %v1092_v31  ;;  %v243_v52 = vrot.slane %v226_v15, %v992_v29  ;;  %v328_v53 = vmul.f32 %v311_v41, %v304_v19  ;;  %p844_p10 = scmp.ne.s32.totalorder %s753_s20, %s843_s21  ;;  %p849_p12 = scmp.lt.s32.totalorder %s843_s21, %s843_s21 }
 0x189   :  { %587 = vmatpush1.msra.mxu0 %v515_v6  ;;  %v289_v55 = vmul.f32 %v275_v42, %v263_v36 }
 0x18a   :  { %v257_v54 = vpop.permute.xlu1 %256  ;;  %588 = vmatprep.subr.mxu0 %v476_v43  ;;  %v259_v61 = vpop.permute.xlu0 %258  ;;  %p850_p13 = por %p849_p12, %p848_p11 }
 0x18b   :  { %v262_v14 = vsel %vm260_vm7, %v255_v5, %v257_v54  ;;  %v261_v21 = vsel %vm260_vm7, %v257_v54, %v259_v61  ;;  %589 = vmatpush1.msra.mxu0 %v475_v62  ;;  %v264_v22 = vsel %vm260_vm7, %v259_v61, %v253_v51 }
 0x18c   :  { %v290_v33 = vmul.f32 %v279_v8, %v262_v14  ;;  %v291_v35 = vmul.f32 %v283_v9, %v261_v21  ;;  %590 = vmatprep.subr.mxu0 %v436_v13  ;;  %v288_v57 = vmul.f32 %v271_v44, %v264_v22  ;;  %p851_p0 = pnand %p850_p13, %p844_p10 }
 0x18d   :  { %591 = vmatpush1.msra.mxu0 %v435_v18 }
 0x18e   :  { %v212_v23 = vpop.permute.xlu1 %211  ;;  %592 = vmatprep.subr.mxu0 %v396_v10  ;;  %669 = vmatprep.subr.mxu1 %v291_v35  ;;  %v214_v45 = vpop.permute.xlu0 %213 }
 0x18f   :  { %593 = vmatpush1.msra.mxu0 %v395_v60  ;;  %670 = vmatpush1.msra.mxu1 %v290_v33  ;;  %v224_v34 = vsel %vm221_vm8, %v212_v23, %v214_v45 }
 0x190   :  { %594 = vmatprep.subr.mxu0 %v369_v2  ;;  %v249_v29 = vmul.f32 %v235_v37, %v224_v34 }
 0x191   :  { %595 = vmatpush1.msra.mxu0 %v368_v46 }
 0x192   :  { %v216_v56 = vpop.permute.xlu1 %215  ;;  %v218_v40 = vpop.permute.xlu0 %217  ;;  %596 = vmatprep.subr.mxu0 %v329_v48 }
 0x193   :  { %v223_v28 = vsel %vm221_vm8, %v214_v45, %v216_v56  ;;  %v222_v58 = vsel %vm221_vm8, %v216_v56, %v218_v40  ;;  %v225_v31 = vsel %vm221_vm8, %v218_v40, %v212_v23  ;;  %597 = vmatpush1.msra.mxu0 %v328_v53 }
 0x194   :  { %v250_v59 = vmul.f32 %v239_v47, %v223_v28  ;;  %v248_v63 = vmul.f32 %v231_v25, %v225_v31  ;;  %v251_v0 = vmul.f32 %v243_v52, %v222_v58  ;;  %598 = vmatprep.subr.mxu0 %v289_v55 }
 0x195   :  { %599 = vmatpush1.msra.mxu0 %v288_v57 }
 0x196   :  { %600 = vmatprep.subr.mxu0 %v249_v29  ;;  %671 = vmatprep.subr.mxu1 %v251_v0 }
 0x197   :  { %601 = vmatpush1.msra.mxu0 %v248_v63  ;;  %672 = vmatpush1.msra.mxu1 %v250_v59 }
 0x198   :  { %764 = vmatmul.mubr.msk.f32.vlgmr.msra.gmra.mxu0 %vm566_vm9, %v559_v38  ;;  %765 = vmatmul.mubr.msk.f32.vlgmr.msra.gmra.mxu1 %vm566_vm9, %v559_v38 }
 0x19f   :  { %v564_v24 = vpop.permute.xlu1 %563 }
 0x258   :  { %v636_v26 = vpop.f32.mrf.mxu0  ;;  %v707_v27 = vpop.f32.mrf.mxu1 }
 0x259   :  { %v637_v3 = vadd.f32 %v636_v26, %v564_v24  ;;  %v708_v4 = vadd.f32 %v707_v27, %v564_v24 }
 0x25a   :  { %v638_v32 = vpop.f32.mrf.mxu0  ;;  %v709_v39 = vpop.f32.mrf.mxu1 }
 0x25b   :  { %v766_v51 = vmul.f32 -1.442695, %v637_v3  ;;  %v768_v5 = vmul.f32 -1.442695, %v708_v4  ;;  %v639_v6 = vadd.f32 %v638_v32, %v564_v24  ;;  %v710_v49 = vadd.f32 %v709_v39, %v564_v24 }
 0x25d   :  { %787 = vpow2.f32 %v766_v51  ;;  %v767_v1 = vmul.f32 -1.442695, %v639_v6  ;;  %v769_v7 = vmul.f32 -1.442695, %v710_v49 }
 0x25e   :  { %789 = vpow2.f32 %v768_v5 }
 0x25f   :  { %791 = vpow2.f32 %v767_v1 }
 0x260   :  { %793 = vpow2.f32 %v769_v7 }
 0x26a   :  { %v788_v43 = vpop.eup %787 }
 0x26b   :  { %v790_v50 = vpop.eup %789  ;;  %v724_v8 = vadd.f32 1.0, %v788_v43 }
 0x26c   :  { %v792_v9 = vpop.eup %791  ;;  %v726_v62 = vadd.f32 1.0, %v790_v50 }
 0x26d   :  { %v794_v10 = vpop.eup %793  ;;  %795 = vrcp.f32 %v724_v8  ;;  %v725_v60 = vadd.f32 1.0, %v792_v9 }
 0x26e   :  { %797 = vrcp.f32 %v726_v62  ;;  %v727_v13 = vadd.f32 1.0, %v794_v10 }
 0x26f   :  { %799 = vrcp.f32 %v725_v60 }
 0x270   :  { %801 = vrcp.f32 %v727_v13 }
 0x27a   :  { %v796_v16 = vpop.eup %795 }
 0x27b   :  { %v798_v17 = vpop.eup %797 }
 0x27c   :  { %v800_v54 = vpop.eup %799 }
 0x27d   :  { %v802_v61 = vpop.eup %801  ;;  %v740_v18 = vcombine.low %v796_v16, %v800_v54 }
 0x27e   :  { %v741_v20 = vcombine.low %v798_v17, %v802_v61 }
 0x27f   :  { %744 = vst [vmem:[#allocation7] sm:$0xff] %v740_v18 }
 0x280   :  { %745 = vst [vmem:[#allocation7 + $0x8] sm:$0xff] %v741_v20 }
 0x281   :  { %854 = shalt.err (!%p851_p0)
}
 0x282   :  { %755 = dma.vmem_to_hbm [thread:$0]  %s753_s20, 256, %s1224_s6, [#allocation4]  }
 0x283   :  { %867 = dma.done.wait [#allocation4], 256  }
 0x284   :  { %868 = vsyncadd [#allocation4], 4294967040 }
 0x285   :  { %759 = vsyncpa [#allocation3], 1 }
 0x286   :  { %760 = vsyncpa [#allocation6], 1 }
 0x287   :  { %761 = vsyncpa [#allocation4], 1 }

</bundles_post_ra>
